<compile_context>
chip_gen: v6e
topology: v6e:2x2x1
jax: 0.10.0
libtpu: 0.0.40
codegen_flags: <defaults>
</compile_context>

<pallas_src>
import jax
import jax.numpy as jnp
from jax.experimental import pallas as pl
from jax.experimental.pallas import tpu as pltpu

LANE = 128
NEG_SLOPE = 0.01  # torch.nn.functional.leaky_relu default


def _leaky_relu(v, negative_slope=NEG_SLOPE):
    return jnp.where(v > 0, v, negative_slope * v)


def _round_up(n, m):
    return (n + m - 1) // m * m


# ---------------------------------------------------------------------------
# Kernel: one batch tile per grid step; all weights resident in VMEM.
# Weights are pre-transposed to [in, out]; hidden dim zero-padded to 128 lanes.
# Matmul inputs in `compute_dtype` (bf16 fast path), accumulation + elementwise
# in f32.  Input cast f32 -> bf16 happens in-register (hides under the DMA).
# ---------------------------------------------------------------------------
def xnet_kernel(x_ref, u_ref,
                w1x_ref, w1u_ref, b1_ref,
                w2_ref, b2_ref,
                w3_ref, b3_ref,
                w4_ref, b4_ref,
                out_ref):
    cd = w2_ref.dtype  # MXU input dtype (bf16 on the fast path, f32 otherwise)

    x = x_ref[...].astype(cd)
    u = u_ref[...].astype(cd)

    # Layer 1 (fused hstack): x @ W1[:x_dim] + u @ W1[x_dim:] + b1
    h = (jnp.dot(x, w1x_ref[...], preferred_element_type=jnp.float32)
         + jnp.dot(u, w1u_ref[...], preferred_element_type=jnp.float32)
         + b1_ref[...])
    h = _leaky_relu(h).astype(cd)

    h = _leaky_relu(
        jnp.dot(h, w2_ref[...], preferred_element_type=jnp.float32) + b2_ref[...]
    ).astype(cd)
    h = _leaky_relu(
        jnp.dot(h, w3_ref[...], preferred_element_type=jnp.float32) + b3_ref[...]
    ).astype(cd)

    out = jnp.dot(h, w4_ref[...], preferred_element_type=jnp.float32) + b4_ref[...]
    out_ref[...] = out.astype(out_ref.dtype)


# ---------------------------------------------------------------------------
# Parameters (logical, unpadded) — weights stored [in, out], biases [1, out].
# Matches the PyTorch spec: kaiming_uniform_ (default a=0) weights, default
# nn.Linear bias init.
# ---------------------------------------------------------------------------
def init_xnet_params(key, x_dim, u_dim, dtype=jnp.float32):
    in_dim = x_dim + u_dim
    hid = x_dim * 4
    dims = [(in_dim, hid), (hid, hid), (hid, hid), (hid, x_dim)]
    params = {}
    keys = jax.random.split(key, 2 * len(dims))
    for i, (fan_in, fan_out) in enumerate(dims):
        bound_w = (6.0 / fan_in) ** 0.5          # kaiming_uniform_ (a=0), as in spec
        w = jax.random.uniform(keys[2 * i], (fan_in, fan_out), dtype,
                               minval=-bound_w, maxval=bound_w)
        bound_b = 1.0 / (fan_in ** 0.5)          # nn.Linear default bias init
        b = jax.random.uniform(keys[2 * i + 1], (1, fan_out), dtype,
                               minval=-bound_b, maxval=bound_b)
        params[f"w{i + 1}"] = w
        params[f"b{i + 1}"] = b
    return params


# ---------------------------------------------------------------------------
# One-time operand preparation (hoisted out of the per-call path).
# Splits W1 for the fused concat, zero-pads the hidden dim to 128 lanes,
# casts weights to the MXU compute dtype.  Output/last layer stays narrow.
# ---------------------------------------------------------------------------
def prepare_xnet_operands(params, x_dim, compute_dtype=jnp.bfloat16):
    hid = params["w1"].shape[1]
    hid_p = _round_up(hid, LANE)

    def pad2(a, rows, cols):
        return jnp.pad(a, ((0, rows - a.shape[0]), (0, cols - a.shape[1])))

    w1 = params["w1"]
    u_rows = w1.shape[0] - x_dim
    ops = (
        pad2(w1[:x_dim], x_dim, hid_p).astype(compute_dtype),   # w1x  [x_dim, hid_p]
        pad2(w1[x_dim:], u_rows, hid_p).astype(compute_dtype),  # w1u  [u_dim, hid_p]
        pad2(params["b1"], 1, hid_p).astype(jnp.float32),
        pad2(params["w2"], hid_p, hid_p).astype(compute_dtype),
        pad2(params["b2"], 1, hid_p).astype(jnp.float32),
        pad2(params["w3"], hid_p, hid_p).astype(compute_dtype),
        pad2(params["b3"], 1, hid_p).astype(jnp.float32),
        pad2(params["w4"], hid_p, params["w4"].shape[1]).astype(compute_dtype),
        params["b4"].astype(jnp.float32),                       # [1, out_dim]
    )
    return ops


# ---------------------------------------------------------------------------
# Wrapper: batch grid, narrow output (B, out_dim), no wrapper-side pads/casts.
# ---------------------------------------------------------------------------
def xnet_forward(x_in, u_in, ops, *, block_b=2048, out_dtype=None):
    B, x_dim = x_in.shape
    u_dim = u_in.shape[1]
    w1x, w1u, b1, w2, b2, w3, b3, w4, b4 = ops
    hid_p = w1x.shape[1]
    out_dim = w4.shape[1]
    out_dtype = out_dtype or x_in.dtype

    assert w1x.shape[0] == x_dim and w1u.shape[0] == u_dim

    # Batch tile: multiple of 8 sublanes, large to amortize per-step overhead.
    tb = _round_up(min(block_b, B), 8)
    # Keep at least 2 grid steps when there's enough work (v7x megacore: both
    # TensorCores get a balanced share; each keeps its own resident weights).
    if B > 512:
        tb = min(tb, _round_up(pl.cdiv(B, 2), 8))
    grid = (pl.cdiv(B, tb),)   # edge tile masked by Pallas (no cross-row ops)

    resident = lambda op: pl.BlockSpec(op.shape, lambda i: (0, 0))
    in_specs = [
        pl.BlockSpec((tb, x_dim), lambda i: (i, 0)),
        pl.BlockSpec((tb, u_dim), lambda i: (i, 0)),
    ] + [resident(op) for op in ops]

    flops = 2 * B * (x_dim * hid_p + u_dim * hid_p
                     + 2 * hid_p * hid_p + hid_p * out_dim)
    bytes_accessed = (int(x_in.size) * x_in.dtype.itemsize
                      + int(u_in.size) * u_in.dtype.itemsize
                      + sum(int(o.size) * o.dtype.itemsize for o in ops)
                      + B * out_dim * jnp.dtype(out_dtype).itemsize)

    return pl.pallas_call(
        xnet_kernel,
        out_shape=jax.ShapeDtypeStruct((B, out_dim), out_dtype),
        grid=grid,
        in_specs=in_specs,
        out_specs=pl.BlockSpec((tb, out_dim), lambda i: (i, 0)),
        compiler_params=pltpu.CompilerParams(
            dimension_semantics=("parallel",),
            vmem_limit_bytes=32 * 1024 * 1024),
        cost_estimate=pl.CostEstimate(flops=flops, transcendentals=0,
                                      bytes_accessed=bytes_accessed),
    )(x_in, u_in, *ops)


# ---------------------------------------------------------------------------
# References
# ---------------------------------------------------------------------------
def xnet_reference(x_in, u_in, params):
    """Full-precision (f32) reference — exact module semantics."""
    h = jnp.concatenate([x_in, u_in], axis=1)
    for i in (1, 2, 3):
        h = _leaky_relu(h @ params[f"w{i}"] + params[f"b{i}"])
    return h @ params["w4"] + params["b4"]


def xnet_reference_matched(x_in, u_in, params, x_dim, compute_dtype):
    """Reference with the same bf16-input / f32-accumulate discipline as the kernel."""
    w1 = params["w1"].astype(compute_dtype)
    x = x_in.astype(compute_dtype)
    u = u_in.astype(compute_dtype)
    h = (jnp.dot(x, w1[:x_dim], preferred_element_type=jnp.float32)
         + jnp.dot(u, w1[x_dim:], preferred_element_type=jnp.float32)
         + params["b1"])
    h = _leaky_relu(h).astype(compute_dtype)
    for i in (2, 3):
        h = _leaky_relu(
            jnp.dot(h, params[f"w{i}"].astype(compute_dtype),
                    preferred_element_type=jnp.float32) + params[f"b{i}"]
        ).astype(compute_dtype)
    return (jnp.dot(h, params["w4"].astype(compute_dtype),
                    preferred_element_type=jnp.float32) + params["b4"])


if __name__ == "__main__":
    key = jax.random.PRNGKey(0)
    k_params, k_x, k_u, k_x2, k_u2 = jax.random.split(key, 5)

    batch, x_dim, u_dim = 8, 16, 8

    params = init_xnet_params(k_params, x_dim, u_dim)
    x_in = jax.random.normal(k_x, (batch, x_dim), jnp.float32)
    u_in = jax.random.normal(k_u, (batch, u_dim), jnp.float32)

    # Prepared (padded / cast) weights are built once and reused across calls.
    ops_f32 = prepare_xnet_operands(params, x_dim, compute_dtype=jnp.float32)
    ops_bf16 = prepare_xnet_operands(params, x_dim, compute_dtype=jnp.bfloat16)

    # 1) exact-semantics path (f32 MXU inputs) vs. full-precision reference
    out_f32 = jax.block_until_ready(xnet_forward(x_in, u_in, ops_f32))
    ref_f32 = xnet_reference(x_in, u_in, params)
    assert out_f32.shape == (batch, x_dim)
    assert jnp.allclose(out_f32, ref_f32, atol=1e-4, rtol=1e-4), \
        float(jnp.max(jnp.abs(out_f32 - ref_f32)))

    # 2) fast path (bf16 MXU inputs, f32 accumulation) vs. matched-precision reference
    out_bf16 = jax.block_until_ready(xnet_forward(x_in, u_in, ops_bf16))
    ref_matched = xnet_reference_matched(x_in, u_in, params, x_dim, jnp.bfloat16)
    assert out_bf16.shape == (batch, x_dim)
    assert jnp.allclose(out_bf16, ref_matched, atol=2e-2, rtol=2e-2), \
        float(jnp.max(jnp.abs(out_bf16 - ref_matched)))

    # 3) multi-tile grid + masked edge tile (B not a multiple of the batch tile)
    b_edge = 300
    x_e = jax.random.normal(k_x2, (b_edge, x_dim), jnp.float32)
    u_e = jax.random.normal(k_u2, (b_edge, u_dim), jnp.float32)
    out_e = jax.block_until_ready(xnet_forward(x_e, u_e, ops_f32, block_b=128))
    ref_e = xnet_reference(x_e, u_e, params)
    assert out_e.shape == (b_edge, x_dim)
    assert jnp.allclose(out_e, ref_e, atol=1e-3, rtol=1e-3), \
        float(jnp.max(jnp.abs(out_e - ref_e)))

    print("KERNEL_OK")
</pallas_src>

<mosaic_0001>
module attributes {stable_mosaic.version = 11 : i64} {
  func.func @xnet_kernel(%arg0: i32, %arg1: memref<8x16xf32, #tpu.memory_space<vmem>>, %arg2: memref<8x8xf32, #tpu.memory_space<vmem>>, %arg3: memref<16x128xf32, #tpu.memory_space<vmem>>, %arg4: memref<8x128xf32, #tpu.memory_space<vmem>>, %arg5: memref<1x128xf32, #tpu.memory_space<vmem>>, %arg6: memref<128x128xf32, #tpu.memory_space<vmem>>, %arg7: memref<1x128xf32, #tpu.memory_space<vmem>>, %arg8: memref<128x128xf32, #tpu.memory_space<vmem>>, %arg9: memref<1x128xf32, #tpu.memory_space<vmem>>, %arg10: memref<128x16xf32, #tpu.memory_space<vmem>>, %arg11: memref<1x16xf32, #tpu.memory_space<vmem>>, %arg12: memref<8x16xf32, #tpu.memory_space<vmem>>) attributes {dimension_semantics = [#tpu.dimension_semantics<parallel>], iteration_bounds = array<i64: 1>, scalar_prefetch = 0 : i64, scratch_operands = 0 : i64, tpu.core_type = #tpu.core_type<tc>, window_params = [{transform_indices = @transform_0, window_bounds = array<i64: 8, 16>}, {transform_indices = @transform_1, window_bounds = array<i64: 8, 8>}, {pipeline_mode = #tpu.pipeline_mode<synchronous>, transform_indices = @transform_2, window_bounds = array<i64: 16, 128>}, {pipeline_mode = #tpu.pipeline_mode<synchronous>, transform_indices = @transform_3, window_bounds = array<i64: 8, 128>}, {pipeline_mode = #tpu.pipeline_mode<synchronous>, transform_indices = @transform_4, window_bounds = array<i64: 1, 128>}, {pipeline_mode = #tpu.pipeline_mode<synchronous>, transform_indices = @transform_5, window_bounds = array<i64: 128, 128>}, {pipeline_mode = #tpu.pipeline_mode<synchronous>, transform_indices = @transform_6, window_bounds = array<i64: 1, 128>}, {pipeline_mode = #tpu.pipeline_mode<synchronous>, transform_indices = @transform_7, window_bounds = array<i64: 128, 128>}, {pipeline_mode = #tpu.pipeline_mode<synchronous>, transform_indices = @transform_8, window_bounds = array<i64: 1, 128>}, {pipeline_mode = #tpu.pipeline_mode<synchronous>, transform_indices = @transform_9, window_bounds = array<i64: 128, 16>}, {pipeline_mode = #tpu.pipeline_mode<synchronous>, transform_indices = @transform_10, window_bounds = array<i64: 1, 16>}, {transform_indices = @transform_11, window_bounds = array<i64: 8, 16>}]} {
    %c0 = arith.constant 0 : index
    %c0_0 = arith.constant 0 : index
    %0 = vector.load %arg1[%c0, %c0_0] : memref<8x16xf32, #tpu.memory_space<vmem>>, vector<8x16xf32>
    %c0_1 = arith.constant 0 : index
    %c0_2 = arith.constant 0 : index
    %1 = vector.load %arg2[%c0_1, %c0_2] : memref<8x8xf32, #tpu.memory_space<vmem>>, vector<8x8xf32>
    %c0_3 = arith.constant 0 : index
    %c0_4 = arith.constant 0 : index
    %2 = vector.load %arg3[%c0_3, %c0_4] : memref<16x128xf32, #tpu.memory_space<vmem>>, vector<16x128xf32>
    %cst = arith.constant dense<0.000000e+00> : vector<8x128xf32>
    %3 = tpu.matmul %0, %2, %cst {dimension_numbers = #tpu.dot_dimension_numbers<[1], [0], [0], [1], [0, 0, 1, 1], [], []>} : vector<8x16xf32>, vector<16x128xf32>, vector<8x128xf32> -> vector<8x128xf32>
    %c0_5 = arith.constant 0 : index
    %c0_6 = arith.constant 0 : index
    %4 = vector.load %arg4[%c0_5, %c0_6] : memref<8x128xf32, #tpu.memory_space<vmem>>, vector<8x128xf32>
    %cst_7 = arith.constant dense<0.000000e+00> : vector<8x128xf32>
    %5 = tpu.matmul %1, %4, %cst_7 {dimension_numbers = #tpu.dot_dimension_numbers<[1], [0], [0], [1], [0, 0, 1, 1], [], []>} : vector<8x8xf32>, vector<8x128xf32>, vector<8x128xf32> -> vector<8x128xf32>
    %6 = arith.addf %3, %5 : vector<8x128xf32>
    %c0_8 = arith.constant 0 : index
    %c0_9 = arith.constant 0 : index
    %7 = vector.load %arg5[%c0_8, %c0_9] : memref<1x128xf32, #tpu.memory_space<vmem>>, vector<1x128xf32>
    %8 = vector.broadcast %7 : vector<1x128xf32> to vector<8x128xf32>
    %9 = arith.addf %6, %8 : vector<8x128xf32>
    %cst_10 = arith.constant 0.000000e+00 : f32
    %10 = vector.broadcast %cst_10 : f32 to vector<8x128xf32>
    %11 = arith.cmpf ogt, %9, %10 : vector<8x128xf32>
    %cst_11 = arith.constant 0.00999999977 : f32
    %12 = vector.broadcast %cst_11 : f32 to vector<8x128xf32>
    %13 = arith.mulf %12, %9 : vector<8x128xf32>
    %14 = arith.select %11, %9, %13 : vector<8x128xi1>, vector<8x128xf32>
    %c0_12 = arith.constant 0 : index
    %c0_13 = arith.constant 0 : index
    %15 = vector.load %arg6[%c0_12, %c0_13] : memref<128x128xf32, #tpu.memory_space<vmem>>, vector<128x128xf32>
    %cst_14 = arith.constant dense<0.000000e+00> : vector<8x128xf32>
    %16 = tpu.matmul %14, %15, %cst_14 {dimension_numbers = #tpu.dot_dimension_numbers<[1], [0], [0], [1], [0, 0, 1, 1], [], []>} : vector<8x128xf32>, vector<128x128xf32>, vector<8x128xf32> -> vector<8x128xf32>
    %c0_15 = arith.constant 0 : index
    %c0_16 = arith.constant 0 : index
    %17 = vector.load %arg7[%c0_15, %c0_16] : memref<1x128xf32, #tpu.memory_space<vmem>>, vector<1x128xf32>
    %18 = vector.broadcast %17 : vector<1x128xf32> to vector<8x128xf32>
    %19 = arith.addf %16, %18 : vector<8x128xf32>
    %cst_17 = arith.constant 0.000000e+00 : f32
    %20 = vector.broadcast %cst_17 : f32 to vector<8x128xf32>
    %21 = arith.cmpf ogt, %19, %20 : vector<8x128xf32>
    %cst_18 = arith.constant 0.00999999977 : f32
    %22 = vector.broadcast %cst_18 : f32 to vector<8x128xf32>
    %23 = arith.mulf %22, %19 : vector<8x128xf32>
    %24 = arith.select %21, %19, %23 : vector<8x128xi1>, vector<8x128xf32>
    %c0_19 = arith.constant 0 : index
    %c0_20 = arith.constant 0 : index
    %25 = vector.load %arg8[%c0_19, %c0_20] : memref<128x128xf32, #tpu.memory_space<vmem>>, vector<128x128xf32>
    %cst_21 = arith.constant dense<0.000000e+00> : vector<8x128xf32>
    %26 = tpu.matmul %24, %25, %cst_21 {dimension_numbers = #tpu.dot_dimension_numbers<[1], [0], [0], [1], [0, 0, 1, 1], [], []>} : vector<8x128xf32>, vector<128x128xf32>, vector<8x128xf32> -> vector<8x128xf32>
    %c0_22 = arith.constant 0 : index
    %c0_23 = arith.constant 0 : index
    %27 = vector.load %arg9[%c0_22, %c0_23] : memref<1x128xf32, #tpu.memory_space<vmem>>, vector<1x128xf32>
    %28 = vector.broadcast %27 : vector<1x128xf32> to vector<8x128xf32>
    %29 = arith.addf %26, %28 : vector<8x128xf32>
    %cst_24 = arith.constant 0.000000e+00 : f32
    %30 = vector.broadcast %cst_24 : f32 to vector<8x128xf32>
    %31 = arith.cmpf ogt, %29, %30 : vector<8x128xf32>
    %cst_25 = arith.constant 0.00999999977 : f32
    %32 = vector.broadcast %cst_25 : f32 to vector<8x128xf32>
    %33 = arith.mulf %32, %29 : vector<8x128xf32>
    %34 = arith.select %31, %29, %33 : vector<8x128xi1>, vector<8x128xf32>
    %c0_26 = arith.constant 0 : index
    %c0_27 = arith.constant 0 : index
    %35 = vector.load %arg10[%c0_26, %c0_27] : memref<128x16xf32, #tpu.memory_space<vmem>>, vector<128x16xf32>
    %cst_28 = arith.constant dense<0.000000e+00> : vector<8x16xf32>
    %36 = tpu.matmul %34, %35, %cst_28 {dimension_numbers = #tpu.dot_dimension_numbers<[1], [0], [0], [1], [0, 0, 1, 1], [], []>} : vector<8x128xf32>, vector<128x16xf32>, vector<8x16xf32> -> vector<8x16xf32>
    %c0_29 = arith.constant 0 : index
    %c0_30 = arith.constant 0 : index
    %37 = vector.load %arg11[%c0_29, %c0_30] : memref<1x16xf32, #tpu.memory_space<vmem>>, vector<1x16xf32>
    %38 = vector.broadcast %37 : vector<1x16xf32> to vector<8x16xf32>
    %39 = arith.addf %36, %38 : vector<8x16xf32>
    %c0_31 = arith.constant 0 : index
    %c0_32 = arith.constant 0 : index
    %40 = vector.load %arg12[%c0_31, %c0_32] : memref<8x16xf32, #tpu.memory_space<vmem>>, vector<8x16xf32>
    tpu.vector_store %arg12[%c0_31, %c0_32], %39 {strides = array<i32>} : memref<8x16xf32, #tpu.memory_space<vmem>>, vector<8x16xf32>,
    return
  }
  func.func @transform_0(%arg0: i32) -> (i32, i32) {
    %c0_i32 = arith.constant 0 : i32
    %c0_i32_0 = arith.constant 0 : i32
    return %arg0, %c0_i32 : i32, i32
  }
  func.func @transform_1(%arg0: i32) -> (i32, i32) {
    %c0_i32 = arith.constant 0 : i32
    %c0_i32_0 = arith.constant 0 : i32
    return %arg0, %c0_i32 : i32, i32
  }
  func.func @transform_2(%arg0: i32) -> (i32, i32) {
    %c0_i32 = arith.constant 0 : i32
    %c0_i32_0 = arith.constant 0 : i32
    %c0_i32_1 = arith.constant 0 : i32
    return %c0_i32, %c0_i32_0 : i32, i32
  }
  func.func @transform_3(%arg0: i32) -> (i32, i32) {
    %c0_i32 = arith.constant 0 : i32
    %c0_i32_0 = arith.constant 0 : i32
    %c0_i32_1 = arith.constant 0 : i32
    return %c0_i32, %c0_i32_0 : i32, i32
  }
  func.func @transform_4(%arg0: i32) -> (i32, i32) {
    %c0_i32 = arith.constant 0 : i32
    %c0_i32_0 = arith.constant 0 : i32
    %c0_i32_1 = arith.constant 0 : i32
    return %c0_i32, %c0_i32_0 : i32, i32
  }
  func.func @transform_5(%arg0: i32) -> (i32, i32) {
    %c0_i32 = arith.constant 0 : i32
    %c0_i32_0 = arith.constant 0 : i32
    %c0_i32_1 = arith.constant 0 : i32
    return %c0_i32, %c0_i32_0 : i32, i32
  }
  func.func @transform_6(%arg0: i32) -> (i32, i32) {
    %c0_i32 = arith.constant 0 : i32
    %c0_i32_0 = arith.constant 0 : i32
    %c0_i32_1 = arith.constant 0 : i32
    return %c0_i32, %c0_i32_0 : i32, i32
  }
  func.func @transform_7(%arg0: i32) -> (i32, i32) {
    %c0_i32 = arith.constant 0 : i32
    %c0_i32_0 = arith.constant 0 : i32
    %c0_i32_1 = arith.constant 0 : i32
    return %c0_i32, %c0_i32_0 : i32, i32
  }
  func.func @transform_8(%arg0: i32) -> (i32, i32) {
    %c0_i32 = arith.constant 0 : i32
    %c0_i32_0 = arith.constant 0 : i32
    %c0_i32_1 = arith.constant 0 : i32
    return %c0_i32, %c0_i32_0 : i32, i32
  }
  func.func @transform_9(%arg0: i32) -> (i32, i32) {
    %c0_i32 = arith.constant 0 : i32
    %c0_i32_0 = arith.constant 0 : i32
    %c0_i32_1 = arith.constant 0 : i32
    return %c0_i32, %c0_i32_0 : i32, i32
  }
  func.func @transform_10(%arg0: i32) -> (i32, i32) {
    %c0_i32 = arith.constant 0 : i32
    %c0_i32_0 = arith.constant 0 : i32
    %c0_i32_1 = arith.constant 0 : i32
    return %c0_i32, %c0_i32_0 : i32, i32
  }
  func.func @transform_11(%arg0: i32) -> (i32, i32) {
    %c0_i32 = arith.constant 0 : i32
    %c0_i32_0 = arith.constant 0 : i32
    return %arg0, %c0_i32 : i32, i32
  }
}

</mosaic_0001>

<bundles_post_ra>
// kernel: tpu_custom_call.1
= control target key start
LH: loop header
LB: loop body
LE: loop exit
PB: predicated region body
PF: predicated region fallthrough
CT: control target
= control target key end

     0   :  { %16 = vsyncpa [#allocation3], 0  ;;  %s1215_s0 = inlined_call_operand.hbm [shape: f32[8,16], index: 0, kind: input, shape index: {}]   ;;  %s1216_s1 = inlined_call_operand.hbm [shape: f32[8,8], index: 1, kind: input, shape index: {}]   ;;  %s1217_s2 = inlined_call_operand.vmem [shape: f32[16,128], index: 2, kind: input, shape index: {}]   ;;  %s1218_s3 = inlined_call_operand.hbm [shape: f32[8,128], index: 3, kind: input, shape index: {}]   ;;  %s1219_s4 = inlined_call_operand.hbm [shape: f32[1,128], index: 4, kind: input, shape index: {}]   ;;  %s1220_s5 = inlined_call_operand.vmem [shape: f32[128,128], index: 5, kind: input, shape index: {}]   ;;  %s1221_s6 = inlined_call_operand.hbm [shape: f32[1,128], index: 6, kind: input, shape index: {}]   ;;  %s1222_s7 = inlined_call_operand.hbm [shape: f32[128,128], index: 7, kind: input, shape index: {}]   ;;  %s1223_s8 = inlined_call_operand.hbm [shape: f32[1,128], index: 8, kind: input, shape index: {}]   ;;  %s1224_s9 = inlined_call_operand.vmem [shape: f32[128,16], index: 9, kind: input, shape index: {}]   ;;  %s1225_s10 = inlined_call_operand.vmem [shape: f32[1,16], index: 10, kind: input, shape index: {}]   ;;  %s1226_s11 = inlined_call_operand.hbm [shape: f32[8,16], index: 11, kind: output, shape index: {}]  }
   0x1   :  { %17 = vsyncpa [#allocation6], 0 }
   0x2   :  { %18 = vsyncpa [#allocation9], 0 }
   0x3   :  { %19 = vsyncpa [#allocation12], 0 }
   0x4   :  { %20 = vsyncpa [#allocation4], 0  ;;  %s951_s17 = smov [#allocation5]   ;;  %s952_s19 = smov [#allocation8]  }
   0x5   :  { %s37_s18 = sshll.u32 %s951_s17, 4  ;;  %s59_s20 = sshll.u32 %s952_s19, 4  ;;  %s38_s18 = int_to_ptr.vmem [resolvable:$true] %s37_s18  ;;  %s60_s20 = int_to_ptr.vmem [resolvable:$true] %s59_s20 }
   0x6   :  { %s789_s21 = scalar_lea.vmem %s38_s18, 128  ;;  %p794_p1 = scmp.lt.s32.totalorder %s38_s18, %s38_s18 }
   0x7   :  { %p790_p0 = scmp.ne.s32.totalorder %s38_s18, %s789_s21  ;;  %p795_p2 = scmp.lt.s32.totalorder %s789_s21, %s789_s21 }
   0x9   :  { %p796_p3 = por %p795_p2, %p794_p1 }
   0xb   :  { %p797_p4 = pnand %p796_p3, %p790_p0 }
   0xd   :  { %800 = shalt.err (!%p797_p4)
}
   0xe   :  { %40 = dma.hbm_to_vmem [thread:$0]  %s1216_s1, 128, %s38_s18, [#allocation6]  }
   0xf   :  { %s809_s24 = scalar_lea.vmem %s60_s20, 16  ;;  %s813_s25 = scalar_lea.vmem %s60_s20, 32 }
  0x10   :  { %p810_p5 = scmp.ne.s32.totalorder %s60_s20, %s809_s24  ;;  %p814_p6 = scmp.lt.s32.totalorder %s60_s20, %s60_s20 }
  0x11   :  { %p815_p7 = scmp.lt.s32.totalorder %s813_s25, %s809_s24 }
  0x13   :  { %p816_p8 = por %p815_p7, %p814_p6 }
  0x15   :  { %p817_p9 = pnand %p816_p8, %p810_p5 }
  0x17   :  { %820 = shalt.err (!%p817_p9)
}
  0x18   :  { %62 = dma.hbm_to_vmem [thread:$0]  %s1219_s4, 16, %s60_s20, [#allocation9]  }
  0x19   :  { %s953_s28 = smov [#allocation11]  }
  0x1a   :  { %s80_s29 = sshll.u32 %s953_s28, 4  ;;  %s81_s29 = int_to_ptr.vmem [resolvable:$true] %s80_s29 }
  0x1b   :  { %s829_s30 = scalar_lea.vmem %s81_s29, 2048  ;;  %p834_p11 = scmp.lt.s32.totalorder %s81_s29, %s81_s29 }
  0x1c   :  { %p830_p10 = scmp.ne.s32.totalorder %s81_s29, %s829_s30  ;;  %p835_p12 = scmp.lt.s32.totalorder %s829_s30, %s829_s30 }
  0x1e   :  { %p836_p13 = por %p835_p12, %p834_p11 }
  0x20   :  { %p837_p0 = pnand %p836_p13, %p830_p10 }
  0x22   :  { %840 = shalt.err (!%p837_p0)
}
  0x23   :  { %s954_s1 = smov 128   ;;  %s955_s12 = smov 8  }
  0x24   :  { %86 = dma.hbm_to_vmem [thread:$0]  %s1222_s7, 2048, %s81_s29, [#allocation12], %s954_s1, %s954_s1, %s955_s12  }
  0x25   :  { %s956_s15 = smov [#allocation2]   ;;  %s957_s4 = smov [#allocation7]  }
  0x26   :  { %s27_s16 = sshll.u32 %s956_s15, 4  ;;  %s49_s17 = sshll.u32 %s957_s4, 4  ;;  %s28_s16 = int_to_ptr.vmem [resolvable:$true] %s27_s16  ;;  %s50_s17 = int_to_ptr.vmem [resolvable:$true] %s49_s17 }
  0x27   :  { %s849_s18 = scalar_lea.vmem %s28_s16, 128  ;;  %p854_p2 = scmp.lt.s32.totalorder %s28_s16, %s28_s16 }
  0x28   :  { %p850_p1 = scmp.ne.s32.totalorder %s28_s16, %s849_s18  ;;  %p855_p3 = scmp.lt.s32.totalorder %s849_s18, %s849_s18 }
  0x2a   :  { %p856_p4 = por %p855_p3, %p854_p2 }
  0x2c   :  { %p857_p5 = pnand %p856_p4, %p850_p1 }
  0x2e   :  { %860 = shalt.err (!%p857_p5)
}
  0x2f   :  { %30 = dma.hbm_to_vmem [thread:$0]  %s1215_s0, 128, %s28_s16, [#allocation3]  }
  0x30   :  { %s869_s21 = scalar_lea.vmem %s50_s17, 128  ;;  %p874_p7 = scmp.lt.s32.totalorder %s50_s17, %s50_s17 }
  0x31   :  { %p870_p6 = scmp.ne.s32.totalorder %s50_s17, %s869_s21  ;;  %p875_p8 = scmp.lt.s32.totalorder %s869_s21, %s869_s21 }
  0x33   :  { %p876_p9 = por %p875_p8, %p874_p7 }
  0x35   :  { %p877_p10 = pnand %p876_p9, %p870_p6 }
  0x37   :  { %880 = shalt.err (!%p877_p10)
}
  0x38   :  { %52 = dma.hbm_to_vmem [thread:$0]  %s1218_s3, 128, %s50_s17, [#allocation6]  }
  0x39   :  { %s958_s23 = smov [#allocation10]   ;;  %s959_s25 = smov [#allocation13]  }
  0x3a   :  { %s71_s24 = sshll.u32 %s958_s23, 4  ;;  %s93_s26 = sshll.u32 %s959_s25, 4  ;;  %s72_s24 = int_to_ptr.vmem [resolvable:$true] %s71_s24  ;;  %s94_s26 = int_to_ptr.vmem [resolvable:$true] %s93_s26 }
  0x3b   :  { %s889_s27 = scalar_lea.vmem %s72_s24, 16  ;;  %s893_s0 = scalar_lea.vmem %s72_s24, 32 }
  0x3c   :  { %p890_p11 = scmp.ne.s32.totalorder %s72_s24, %s889_s27  ;;  %p894_p12 = scmp.lt.s32.totalorder %s72_s24, %s72_s24 }
  0x3d   :  { %p895_p13 = scmp.lt.s32.totalorder %s893_s0, %s889_s27 }
  0x3f   :  { %p896_p0 = por %p895_p13, %p894_p12 }
  0x41   :  { %p897_p1 = pnand %p896_p0, %p890_p11 }
  0x43   :  { %900 = shalt.err (!%p897_p1)
}
  0x44   :  { %74 = dma.hbm_to_vmem [thread:$0]  %s1221_s6, 16, %s72_s24, [#allocation9]  }
  0x45   :  { %s909_s30 = scalar_lea.vmem %s94_s26, 16  ;;  %s913_s3 = scalar_lea.vmem %s94_s26, 32 }
  0x46   :  { %p910_p2 = scmp.ne.s32.totalorder %s94_s26, %s909_s30  ;;  %p914_p3 = scmp.lt.s32.totalorder %s94_s26, %s94_s26 }
  0x47   :  { %p915_p4 = scmp.lt.s32.totalorder %s913_s3, %s909_s30 }
  0x49   :  { %p916_p5 = por %p915_p4, %p914_p3 }
  0x4b   :  { %p917_p6 = pnand %p916_p5, %p910_p2 }
  0x4d   :  { %920 = shalt.err (!%p917_p6)
}
  0x4e   :  { %96 = dma.hbm_to_vmem [thread:$0]  %s1223_s8, 16, %s94_s26, [#allocation12]  }
  0x4f   :  { %941 = dma.done.wait [#allocation3], 128  }
  0x50   :  { %942 = vsyncadd [#allocation3], 4294967168 }
  0x51   :  { %943 = dma.done.wait [#allocation6], 256  }
  0x52   :  { %944 = vsyncadd [#allocation6], 4294967040 }
  0x53   :  { %945 = dma.done.wait [#allocation9], 32  }
  0x54   :  { %946 = vsyncadd [#allocation9], 4294967264 }
  0x55   :  { %947 = dma.done.wait [#allocation12], 2064  }
  0x56   :  { %948 = vsyncadd [#allocation12], 4294965232  ;;  %v960_v0 = vmov 0.0   ;;  %vm961_vm0 = vmmov 0   ;;  %vm127_vm1 = vcmask 64512   ;;  %v126_v1 = vld [vmem:[#allocation7] sm:$0xff] }
  0x57   :  { %652 = vmatprep.subr.mxu1 %v960_v0  ;;  %654 = vmatprep.mubr.msk.f32.mxu1 %vm961_vm0, %v960_v0  ;;  %v123_v2 = vld [vmem:[#allocation5] sm:$0xff]  ;;  %v301_v4 = vld [vmem:[%s1220_s5 + $0x78] sm:$0xff]  ;;  %v124_v5 = vld [vmem:[%s1217_s2] sm:$0xff]  ;;  %vm201_vm2 = vcmask 130048   ;;  %s962_s22 = smov [#allocation14]  }
  0x58   :  { %664 = vmatprep.subr.mxu0 %v960_v0  ;;  %696 = vmatprep.mubr.msk.f32.mxu0 %vm961_vm0, %v960_v0  ;;  %v125_v3 = vld [vmem:[%s1217_s2 + $0x8] sm:$0xff]  ;;  %v122_v6 = vld [vmem:[#allocation2] sm:$0xff]  ;;  %v300_v7 = vld [vmem:[%s1220_s5 + $0x70] sm:$0xff]  ;;  %s578_s23 = sshll.u32 %s962_s22, 4  ;;  %s579_s23 = int_to_ptr.vmem [resolvable:$true] %s578_s23 }
  0x59   :  { %653 = vmatpush3.msra.mxu1 %v126_v1  ;;  %665 = vmatpush3.msra.mxu0 %v301_v4  ;;  %v299_v8 = vld [vmem:[%s1220_s5 + $0x68] sm:$0xff]  ;;  %v298_v9 = vld [vmem:[%s1220_s5 + $0x60] sm:$0xff]  ;;  %v297_v10 = vld [vmem:[%s1220_s5 + $0x58] sm:$0xff]  ;;  %p926_p8 = scmp.lt.s32.totalorder %s579_s23, %s579_s23 }
  0x5a   :  { %655 = vmatmul.mubr.msk.f32.vlgmr.msra.gmra.mxu1 %vm127_vm1, %v123_v2  ;;  %657 = vmatprep.subr.mxu1 %v960_v0  ;;  %v296_v11 = vld [vmem:[%s1220_s5 + $0x50] sm:$0xff]  ;;  %v295_v12 = vld [vmem:[%s1220_s5 + $0x48] sm:$0xff]  ;;  %v294_v13 = vld [vmem:[%s1220_s5 + $0x40] sm:$0xff] }
  0x5b   :  { %658 = vmatpush3.msra.mxu1 %v125_v3  ;;  %661 = vmatprep.mubr.msk.f32.mxu1 %vm961_vm0, %v960_v0  ;;  %v293_v14 = vld [vmem:[%s1220_s5 + $0x38] sm:$0xff]  ;;  %v292_v15 = vld [vmem:[%s1220_s5 + $0x30] sm:$0xff]  ;;  %v291_v16 = vld [vmem:[%s1220_s5 + $0x28] sm:$0xff] }
  0x5c   :  { %659 = vmatprep.subr.mxu1 %v960_v0  ;;  %666 = vmatprep.subr.mxu0 %v960_v0  ;;  %v290_v17 = vld [vmem:[%s1220_s5 + $0x20] sm:$0xff]  ;;  %v289_v18 = vld [vmem:[%s1220_s5 + $0x18] sm:$0xff]  ;;  %v288_v19 = vld [vmem:[%s1220_s5 + $0x10] sm:$0xff] }
  0x5d   :  { %660 = vmatpush3.msra.mxu1 %v124_v5  ;;  %667 = vmatpush3.msra.mxu0 %v300_v7  ;;  %v287_v20 = vld [vmem:[%s1220_s5 + $0x8] sm:$0xff]  ;;  %v286_v21 = vld [vmem:[%s1220_s5] sm:$0xff]  ;;  %v397_v22 = vld [vmem:[#allocation11 + $0x78] sm:$0xff] }
  0x5e   :  { %662 = vmatmul.mubr.msk.f32.vlgmr.msra.gmra.mxu1 %vm201_vm2, %v122_v6  ;;  %668 = vmatprep.subr.mxu0 %v960_v0  ;;  %v396_v23 = vld [vmem:[#allocation11 + $0x70] sm:$0xff]  ;;  %v395_v24 = vld [vmem:[#allocation11 + $0x68] sm:$0xff]  ;;  %v394_v25 = vld [vmem:[#allocation11 + $0x60] sm:$0xff] }
  0x5f   :  { %699 = vmatprep.subr.mxu1 %v960_v0  ;;  %669 = vmatpush3.msra.mxu0 %v299_v8  ;;  %v393_v26 = vld [vmem:[#allocation11 + $0x58] sm:$0xff]  ;;  %v392_v27 = vld [vmem:[#allocation11 + $0x50] sm:$0xff]  ;;  %v391_v28 = vld [vmem:[#allocation11 + $0x48] sm:$0xff] }
  0x60   :  { %731 = vmatprep.mubr.msk.f32.mxu1 %vm961_vm0, %v960_v0  ;;  %670 = vmatprep.subr.mxu0 %v960_v0  ;;  %v390_v29 = vld [vmem:[#allocation11 + $0x40] sm:$0xff]  ;;  %v389_v30 = vld [vmem:[#allocation11 + $0x38] sm:$0xff]  ;;  %v388_v31 = vld [vmem:[#allocation11 + $0x30] sm:$0xff] }
  0x61   :  { %671 = vmatpush3.msra.mxu0 %v298_v9  ;;  %700 = vmatpush3.msra.mxu1 %v397_v22  ;;  %v387_v32 = vld [vmem:[#allocation11 + $0x28] sm:$0xff]  ;;  %v386_v33 = vld [vmem:[#allocation11 + $0x20] sm:$0xff]  ;;  %v385_v34 = vld [vmem:[#allocation11 + $0x18] sm:$0xff] }
  0x62   :  { %672 = vmatprep.subr.mxu0 %v960_v0  ;;  %701 = vmatprep.subr.mxu1 %v960_v0  ;;  %v592_v38 = vld [vmem:[#allocation8] ss:$0 sm:$0xff]  ;;  %v384_v44 = vld [vmem:[#allocation11 + $0x10] sm:$0xff]  ;;  %v383_v45 = vld [vmem:[#allocation11 + $0x8] sm:$0xff] }
  0x63   :  { %673 = vmatpush3.msra.mxu0 %v297_v10  ;;  %702 = vmatpush3.msra.mxu1 %v396_v23  ;;  %v382_v46 = vld [vmem:[#allocation11] sm:$0xff]  ;;  %v492_v48 = vld [vmem:[%s1224_s9 + $0x70] sm:$0xff]  ;;  %v491_v49 = vld [vmem:[%s1224_s9 + $0x68] sm:$0xff] }
  0x64   :  { %674 = vmatprep.subr.mxu0 %v960_v0  ;;  %703 = vmatprep.subr.mxu1 %v960_v0  ;;  %v493_v47 = vld [vmem:[%s1224_s9 + $0x78] sm:$0xff]  ;;  %v490_v50 = vld [vmem:[%s1224_s9 + $0x60] sm:$0xff]  ;;  %v488_v52 = vld [vmem:[%s1224_s9 + $0x50] sm:$0xff] }
  0x65   :  { %675 = vmatpush3.msra.mxu0 %v296_v11  ;;  %704 = vmatpush3.msra.mxu1 %v395_v24  ;;  %v489_v51 = vld [vmem:[%s1224_s9 + $0x58] sm:$0xff]  ;;  %v487_v53 = vld [vmem:[%s1224_s9 + $0x48] sm:$0xff]  ;;  %v486_v54 = vld [vmem:[%s1224_s9 + $0x40] sm:$0xff] }
  0x66   :  { %676 = vmatprep.subr.mxu0 %v960_v0  ;;  %705 = vmatprep.subr.mxu1 %v960_v0  ;;  %v485_v55 = vld [vmem:[%s1224_s9 + $0x38] sm:$0xff]  ;;  %v484_v56 = vld [vmem:[%s1224_s9 + $0x30] sm:$0xff]  ;;  %v483_v57 = vld [vmem:[%s1224_s9 + $0x28] sm:$0xff] }
  0x67   :  { %677 = vmatpush3.msra.mxu0 %v295_v12  ;;  %706 = vmatpush3.msra.mxu1 %v394_v25  ;;  %v482_v58 = vld [vmem:[%s1224_s9 + $0x20] sm:$0xff]  ;;  %v481_v59 = vld [vmem:[%s1224_s9 + $0x18] sm:$0xff]  ;;  %v480_v3 = vld [vmem:[%s1224_s9 + $0x10] sm:$0xff] }
  0x68   :  { %678 = vmatprep.subr.mxu0 %v960_v0  ;;  %707 = vmatprep.subr.mxu1 %v960_v0  ;;  %v593_v60 = vld [vmem:[#allocation10] ss:$0 sm:$0xff]  ;;  %v479_v4 = vld [vmem:[%s1224_s9 + $0x8] sm:$0xff]  ;;  %v478_v5 = vld [vmem:[%s1224_s9] sm:$0xff]  ;;  %s921_s9 = scalar_lea.vmem %s579_s23, 128 }
  0x69   :  { %679 = vmatpush3.msra.mxu0 %v294_v13  ;;  %708 = vmatpush3.msra.mxu1 %v393_v26  ;;  %v594_v6 = vld [vmem:[#allocation13] ss:$0 sm:$0xff]  ;;  %v595_v12 = vld [vmem:[%s1225_s10] ss:$0 sm:$0xff]  ;;  %p922_p7 = scmp.ne.s32.totalorder %s579_s23, %s921_s9  ;;  %p927_p9 = scmp.lt.s32.totalorder %s921_s9, %s921_s9 }
  0x6a   :  { %680 = vmatprep.subr.mxu0 %v960_v0  ;;  %709 = vmatprep.subr.mxu1 %v960_v0 }
  0x6b   :  { %681 = vmatpush3.msra.mxu0 %v293_v14  ;;  %710 = vmatpush3.msra.mxu1 %v392_v27  ;;  %p928_p10 = por %p927_p9, %p926_p8 }
  0x6c   :  { %682 = vmatprep.subr.mxu0 %v960_v0  ;;  %711 = vmatprep.subr.mxu1 %v960_v0 }
  0x6d   :  { %683 = vmatpush3.msra.mxu0 %v292_v15  ;;  %712 = vmatpush3.msra.mxu1 %v391_v28  ;;  %p929_p11 = pnand %p928_p10, %p922_p7 }
  0x6e   :  { %684 = vmatprep.subr.mxu0 %v960_v0  ;;  %713 = vmatprep.subr.mxu1 %v960_v0 }
  0x6f   :  { %685 = vmatpush3.msra.mxu0 %v291_v16  ;;  %714 = vmatpush3.msra.mxu1 %v390_v29 }
  0x70   :  { %686 = vmatprep.subr.mxu0 %v960_v0  ;;  %715 = vmatprep.subr.mxu1 %v960_v0 }
  0x71   :  { %687 = vmatpush3.msra.mxu0 %v290_v17  ;;  %716 = vmatpush3.msra.mxu1 %v389_v30 }
  0x72   :  { %688 = vmatprep.subr.mxu0 %v960_v0  ;;  %717 = vmatprep.subr.mxu1 %v960_v0 }
  0x73   :  { %689 = vmatpush3.msra.mxu0 %v289_v18  ;;  %718 = vmatpush3.msra.mxu1 %v388_v31 }
  0x74   :  { %690 = vmatprep.subr.mxu0 %v960_v0  ;;  %719 = vmatprep.subr.mxu1 %v960_v0 }
  0x75   :  { %691 = vmatpush3.msra.mxu0 %v288_v19  ;;  %720 = vmatpush3.msra.mxu1 %v387_v32 }
  0x76   :  { %692 = vmatprep.subr.mxu0 %v960_v0  ;;  %721 = vmatprep.subr.mxu1 %v960_v0 }
  0x77   :  { %693 = vmatpush3.msra.mxu0 %v287_v20  ;;  %722 = vmatpush3.msra.mxu1 %v386_v33 }
  0x78   :  { %694 = vmatprep.subr.mxu0 %v960_v0  ;;  %723 = vmatprep.subr.mxu1 %v960_v0 }
  0x79   :  { %695 = vmatpush3.msra.mxu0 %v286_v21  ;;  %724 = vmatpush3.msra.mxu1 %v385_v34 }
  0x7a   :  { %734 = vmatprep.subr.mxu0 %v960_v0  ;;  %725 = vmatprep.subr.mxu1 %v960_v0 }
  0x7b   :  { %726 = vmatpush3.msra.mxu1 %v384_v44 }
  0x7c   :  { %727 = vmatprep.subr.mxu1 %v960_v0 }
  0x7d   :  { %728 = vmatpush3.msra.mxu1 %v383_v45 }
  0x7e   :  { %729 = vmatprep.subr.mxu1 %v960_v0 }
  0x7f   :  { %730 = vmatpush3.msra.mxu1 %v382_v46 }
 0x11a   :  { %v197_v35 = vpop.f32.mrf.mxu1 }
 0x11c   :  { %v656_v36 = vpop.f32.mrf.mxu1 }
 0x11e   :  { %v271_v37 = vpop.f32.mrf.mxu1 }
 0x11f   :  { %v272_v39 = vadd.f32 %v271_v37, %v197_v35 }
 0x120   :  { %v663_v40 = vpop.f32.mrf.mxu1 }
 0x121   :  { %v282_v41 = vadd.f32 %v592_v38, %v272_v39 }
 0x123   :  { %vm283_vm3 = vcmp.gt.f32.partialorder %v282_v41, 0.0  ;;  %v284_v42 = vmul.f32 0.01, %v282_v41 }
 0x125   :  { %v285_v43 = vsel %vm283_vm3, %v282_v41, %v284_v42 }
 0x126   :  { %697 = vmatmul.mubr.f32.vlgmr.msra.gmra.mxu0 %v285_v43 }
 0x127   :  { %766 = vmatprep.mubr.msk.f32.mxu0 %vm961_vm0, %v960_v0  ;;  %735 = vmatpush3.msra.mxu0 %v493_v47 }
 0x128   :  { %736 = vmatprep.subr.mxu0 %v960_v0 }
 0x129   :  { %737 = vmatpush3.msra.mxu0 %v492_v48 }
 0x12a   :  { %738 = vmatprep.subr.mxu0 %v960_v0 }
 0x12b   :  { %739 = vmatpush3.msra.mxu0 %v491_v49 }
 0x12c   :  { %740 = vmatprep.subr.mxu0 %v960_v0 }
 0x12d   :  { %741 = vmatpush3.msra.mxu0 %v490_v50 }
 0x12e   :  { %742 = vmatprep.subr.mxu0 %v960_v0 }
 0x12f   :  { %743 = vmatpush3.msra.mxu0 %v489_v51 }
 0x130   :  { %744 = vmatprep.subr.mxu0 %v960_v0 }
 0x131   :  { %745 = vmatpush3.msra.mxu0 %v488_v52 }
 0x132   :  { %746 = vmatprep.subr.mxu0 %v960_v0 }
 0x133   :  { %747 = vmatpush3.msra.mxu0 %v487_v53 }
 0x134   :  { %748 = vmatprep.subr.mxu0 %v960_v0 }
 0x135   :  { %749 = vmatpush3.msra.mxu0 %v486_v54 }
 0x136   :  { %750 = vmatprep.subr.mxu0 %v960_v0 }
 0x137   :  { %751 = vmatpush3.msra.mxu0 %v485_v55 }
 0x138   :  { %752 = vmatprep.subr.mxu0 %v960_v0 }
 0x139   :  { %753 = vmatpush3.msra.mxu0 %v484_v56 }
 0x13a   :  { %754 = vmatprep.subr.mxu0 %v960_v0 }
 0x13b   :  { %755 = vmatpush3.msra.mxu0 %v483_v57 }
 0x13c   :  { %756 = vmatprep.subr.mxu0 %v960_v0 }
 0x13d   :  { %757 = vmatpush3.msra.mxu0 %v482_v58 }
 0x13e   :  { %758 = vmatprep.subr.mxu0 %v960_v0 }
 0x13f   :  { %759 = vmatpush3.msra.mxu0 %v481_v59 }
 0x140   :  { %760 = vmatprep.subr.mxu0 %v960_v0 }
 0x141   :  { %761 = vmatpush3.msra.mxu0 %v480_v3 }
 0x142   :  { %762 = vmatprep.subr.mxu0 %v960_v0 }
 0x143   :  { %763 = vmatpush3.msra.mxu0 %v479_v4 }
 0x144   :  { %764 = vmatprep.subr.mxu0 %v960_v0 }
 0x145   :  { %765 = vmatpush3.msra.mxu0 %v478_v5 }
 0x1e6   :  { %v375_v61 = vpop.f32.mrf.mxu0 }
 0x1e7   :  { %v376_v62 = vadd.f32 %v593_v60, %v375_v61 }
 0x1e8   :  { %v698_v63 = vpop.f32.mrf.mxu0 }
 0x1e9   :  { %vm379_vm4 = vcmp.gt.f32.partialorder %v376_v62, 0.0  ;;  %v380_v1 = vmul.f32 0.01, %v376_v62 }
 0x1eb   :  { %v381_v2 = vsel %vm379_vm4, %v376_v62, %v380_v1 }
 0x1ec   :  { %732 = vmatmul.mubr.f32.vlgmr.msra.gmra.mxu1 %v381_v2 }
 0x2ac   :  { %v471_v7 = vpop.f32.mrf.mxu1 }
 0x2ad   :  { %v472_v8 = vadd.f32 %v594_v6, %v471_v7 }
 0x2ae   :  { %v733_v9 = vpop.f32.mrf.mxu1 }
 0x2af   :  { %vm475_vm5 = vcmp.gt.f32.partialorder %v472_v8, 0.0  ;;  %v476_v10 = vmul.f32 0.01, %v472_v8 }
 0x2b1   :  { %v477_v11 = vsel %vm475_vm5, %v472_v8, %v476_v10 }
 0x2b2   :  { %767 = vmatmul.mubr.f32.vlgmr.msra.gmra.mxu0 %v477_v11 }
 0x372   :  { %v567_v13 = vpop.f32.mrf.mxu0 }
 0x373   :  { %v568_v14 = vadd.f32 %v595_v12, %v567_v13 }
 0x374   :  { %v768_v15 = vpop.f32.mrf.mxu0 }
 0x375   :  { %571 = vst.msk [vmem:[#allocation14] sm:$0xff] %vm201_vm2, %v568_v14 }
 0x376   :  { %932 = shalt.err (!%p929_p11)
}
 0x377   :  { %581 = dma.vmem_to_hbm [thread:$0]  %s579_s23, 128, %s1226_s11, [#allocation4]  }
 0x378   :  { %949 = dma.done.wait [#allocation4], 128  }
 0x379   :  { %950 = vsyncadd [#allocation4], 4294967168 }
 0x37a   :  { %585 = vsyncpa [#allocation3], 1 }
 0x37b   :  { %586 = vsyncpa [#allocation6], 1 }
 0x37c   :  { %587 = vsyncpa [#allocation9], 1 }
 0x37d   :  { %588 = vsyncpa [#allocation12], 1 }
 0x37e   :  { %589 = vsyncpa [#allocation4], 1 }

</bundles_post_ra>
